<compile_context>
chip_gen: v7x
topology: tpu7x:2x2x1
jax: 0.10.0
libtpu: 0.0.40
codegen_flags: <defaults>
</compile_context>

<pallas_src>
from typing import NamedTuple

import jax
import jax.numpy as jnp
from jax.experimental import pallas as pl
from jax.experimental.pallas import tpu as pltpu

_LANE = 128           # lane width: last-dim padding granularity
_BF16_SUBLANES = 16   # bf16 packs 2 rows/sublane -> 16-row batch tiles stay unmasked
_WEIGHT_BUFFERS = 1   # constant index_map -> one resident buffer is enough


def _round_up(v, m):
    return ((v + m - 1) // m) * m


def _cdiv(a, b):
    return -(-a // b)


def mlp_kernel(x_ref, w1_ref, b1_ref, w2_ref, b2_ref, y_ref, h_ref):
    """y = relu(relu(x @ W1 + b1) @ W2 + b2) for one batch tile."""
    # fc1: bf16 operands on the MXU, f32 accumulate; bias + ReLU in f32 on the VPU
    # (v5e has no bf16 VPU, so the f32 epilogue is the right path everywhere).
    h = jnp.dot(x_ref[...], w1_ref[...], preferred_element_type=jnp.float32)
    h = jnp.maximum(h + b1_ref[...], 0.0)
    # Stage the hidden activations through a bf16 VMEM scratch: the fused
    # bias+ReLU+cast lands in VMEM instead of spilling an f32 intermediate.
    h_ref[...] = h.astype(h_ref.dtype)
    # fc2
    y = jnp.dot(h_ref[...], w2_ref[...], preferred_element_type=jnp.float32)
    y = jnp.maximum(y + b2_ref[...], 0.0)
    y_ref[...] = y.astype(y_ref.dtype)


class PaddedParams(NamedTuple):
    w1p: jax.Array    # (n_in_p,  n_hid_p)  compute_dtype
    b1p: jax.Array    # (1, n_hid_p)        f32
    w2p: jax.Array    # (n_hid_p, n_cls_p)  compute_dtype
    b2p: jax.Array    # (1, n_cls_p)        f32
    n_inputs: int
    n_hidden: int
    n_classes: int


def prepare_params(w1, b1, w2, b2, compute_dtype=jnp.bfloat16):
    """Pad feature dims to multiples of 128 and cast weights to the compute dtype.

    Call once and reuse the result across forward calls so the per-call wrapper
    never re-pads / re-casts the weight matrices.
    """
    n_in, n_hid = w1.shape
    n_cls = w2.shape[1]
    n_in_p, n_hid_p, n_cls_p = (_round_up(d, _LANE) for d in (n_in, n_hid, n_cls))

    def pad2(a, shape, dtype):
        a = a.astype(dtype)
        if a.shape == shape:
            return a
        return jnp.zeros(shape, dtype).at[:a.shape[0], :a.shape[1]].set(a)

    w1p = pad2(w1, (n_in_p, n_hid_p), compute_dtype)
    w2p = pad2(w2, (n_hid_p, n_cls_p), compute_dtype)
    b1p = pad2(b1.reshape(1, -1), (1, n_hid_p), jnp.float32)
    b2p = pad2(b2.reshape(1, -1), (1, n_cls_p), jnp.float32)
    return PaddedParams(w1p, b1p, w2p, b2p, n_in, n_hid, n_cls)


def _choose_tile_b(B, tile_b_max):
    """Pick a batch tile: bound over-padding, >=2 grid steps when the batch allows
    (so both v7x TensorCores get work), rounded to the bf16 packed sublane tile."""
    n_tiles = _cdiv(B, tile_b_max)
    if n_tiles == 1 and B >= 2 * _BF16_SUBLANES:
        n_tiles = 2
    return _round_up(_cdiv(B, n_tiles), _BF16_SUBLANES)


def _vmem_limit_bytes(tile_b, n_in_p, n_hid_p, n_cls_p, compute_dtype, out_dtype):
    """Size the scoped-VMEM limit from the actual buffers instead of a fixed cap."""
    ci = jnp.dtype(compute_dtype).itemsize
    oi = jnp.dtype(out_dtype).itemsize
    need = (2 * tile_b * n_in_p * ci                      # x tile, double-buffered
            + 2 * tile_b * n_cls_p * oi                   # out tile, double-buffered
            + _WEIGHT_BUFFERS * (n_in_p * n_hid_p + n_hid_p * n_cls_p) * ci
            + _WEIGHT_BUFFERS * (n_hid_p + n_cls_p) * 4   # biases (f32)
            + tile_b * n_hid_p * ci)                      # h staging scratch
    limit = int(need * 1.25) + (4 << 20)                  # headroom for compiler temps
    try:
        cap = int(0.8 * pltpu.get_tpu_info().vmem_capacity_bytes)
    except Exception:
        cap = 48 << 20  # conservative fallback (v7x per-TC VMEM is 64 MiB)
    return max(16 << 20, min(limit, cap))


def multi_layer_forward(x, params: PaddedParams, *, tile_b_max=512):
    """x: (B, n_inputs) -> (B, n_classes)."""
    B, n_in = x.shape
    assert n_in == params.n_inputs
    w1p, b1p, w2p, b2p = params.w1p, params.b1p, params.w2p, params.b2p
    compute_dtype = w1p.dtype
    out_dtype = x.dtype
    n_in_p, n_hid_p = w1p.shape
    n_cls_p = w2p.shape[1]

    tile_b = _choose_tile_b(B, tile_b_max)
    B_p = _round_up(B, tile_b)
    grid = (B_p // tile_b,)

    # Only materialize a padded x copy when padding / casting is actually needed.
    if (B_p, n_in_p) == (B, n_in) and x.dtype == compute_dtype:
        xp = x
    else:
        xp = jnp.zeros((B_p, n_in_p), compute_dtype).at[:B, :n_in].set(
            x.astype(compute_dtype))

    flops = 2 * B_p * (n_in_p * n_hid_p + n_hid_p * n_cls_p)
    bytes_accessed = (xp.size * xp.dtype.itemsize
                      + w1p.size * w1p.dtype.itemsize
                      + b1p.size * b1p.dtype.itemsize
                      + w2p.size * w2p.dtype.itemsize
                      + b2p.size * b2p.dtype.itemsize
                      + B_p * n_cls_p * jnp.dtype(out_dtype).itemsize)

    single_buf = pl.Buffered(_WEIGHT_BUFFERS)

    y_p = pl.pallas_call(
        mlp_kernel,
        out_shape=jax.ShapeDtypeStruct((B_p, n_cls_p), out_dtype),
        grid=grid,
        in_specs=[
            # x tile walks the batch axis -> auto double-buffered (DMA/compute overlap).
            pl.BlockSpec((tile_b, n_in_p), lambda i: (i, 0)),
            # Weights / biases: constant block index -> DMA'd once, single resident
            # buffer (halves their VMEM footprint vs. the default double buffer).
            pl.BlockSpec((n_in_p, n_hid_p), lambda i: (0, 0), pipeline_mode=single_buf),
            pl.BlockSpec((1, n_hid_p), lambda i: (0, 0), pipeline_mode=single_buf),
            pl.BlockSpec((n_hid_p, n_cls_p), lambda i: (0, 0), pipeline_mode=single_buf),
            pl.BlockSpec((1, n_cls_p), lambda i: (0, 0), pipeline_mode=single_buf),
        ],
        out_specs=pl.BlockSpec((tile_b, n_cls_p), lambda i: (i, 0)),
        scratch_shapes=[pltpu.VMEM((tile_b, n_hid_p), compute_dtype)],
        compiler_params=pltpu.CompilerParams(
            # Batch tiles are independent -> megacore-shardable on v7x.
            dimension_semantics=("parallel",),
            vmem_limit_bytes=_vmem_limit_bytes(
                tile_b, n_in_p, n_hid_p, n_cls_p, compute_dtype, out_dtype),
        ),
        cost_estimate=pl.CostEstimate(
            flops=flops, transcendentals=0, bytes_accessed=bytes_accessed),
    )(xp, w1p, b1p, w2p, b2p)

    return y_p[:B, :params.n_classes]


def multi_layer_forward_raw(x, w1, b1, w2, b2, **kwargs):
    """Convenience wrapper for un-prepared (unpadded, un-cast) weights."""
    return multi_layer_forward(x, prepare_params(w1, b1, w2, b2), **kwargs)


def init_params(key, n_inputs, n_hidden, n_classes, dtype=jnp.float32):
    """Deterministic synthetic init (uniform like PyTorch's default Linear init)."""
    k1, k2, k3, k4 = jax.random.split(key, 4)
    lim1 = 1.0 / jnp.sqrt(n_inputs)
    lim2 = 1.0 / jnp.sqrt(n_hidden)
    w1 = jax.random.uniform(k1, (n_inputs, n_hidden), dtype, -lim1, lim1)
    b1 = jax.random.uniform(k2, (1, n_hidden), dtype, -lim1, lim1)
    w2 = jax.random.uniform(k3, (n_hidden, n_classes), dtype, -lim2, lim2)
    b2 = jax.random.uniform(k4, (1, n_classes), dtype, -lim2, lim2)
    return w1, b1, w2, b2


if __name__ == "__main__":
    key = jax.random.PRNGKey(0)
    kx, kp = jax.random.split(key)

    batch, n_inputs, n_hidden, n_classes = 2, 32, 32, 8
    x = jax.random.normal(kx, (batch, n_inputs), jnp.float32)
    w1, b1, w2, b2 = init_params(kp, n_inputs, n_hidden, n_classes)

    params = prepare_params(w1, b1, w2, b2)   # pad + cast weights once, reuse per call
    y = multi_layer_forward(x, params)
    y = jax.block_until_ready(y)
    assert y.shape == (batch, n_classes)

    # Reference 1: mirror the kernel's mixed precision (bf16 matmuls, f32 accumulate,
    # bf16-staged hidden activations).
    xb, w1b, w2b = (t.astype(jnp.bfloat16) for t in (x, w1, w2))
    h_mp = jnp.maximum(
        jnp.dot(xb, w1b, preferred_element_type=jnp.float32) + b1, 0.0)
    y_mp = jnp.maximum(
        jnp.dot(h_mp.astype(jnp.bfloat16), w2b,
                preferred_element_type=jnp.float32) + b2, 0.0)
    assert jnp.allclose(y, y_mp, atol=2e-3, rtol=2e-3)

    # Reference 2: pure f32 forward (loose tolerance for the bf16 MXU path).
    h_ref = jnp.maximum(x @ w1 + b1, 0.0)
    y_ref = jnp.maximum(h_ref @ w2 + b2, 0.0)
    assert jnp.allclose(y, y_ref, atol=2e-2, rtol=2e-2)

    print("KERNEL_OK")
</pallas_src>

<mosaic_0001>
module attributes {stable_mosaic.version = 11 : i64} {
  func.func @mlp_kernel(%arg0: i32, %arg1: memref<16x128xbf16, #tpu.memory_space<vmem>>, %arg2: memref<128x128xbf16, #tpu.memory_space<vmem>>, %arg3: memref<1x128xf32, #tpu.memory_space<vmem>>, %arg4: memref<128x128xbf16, #tpu.memory_space<vmem>>, %arg5: memref<1x128xf32, #tpu.memory_space<vmem>>, %arg6: memref<16x128xf32, #tpu.memory_space<vmem>>, %arg7: memref<16x128xbf16, #tpu.memory_space<vmem>>) attributes {dimension_semantics = [#tpu.dimension_semantics<parallel>], iteration_bounds = array<i64: 1>, scalar_prefetch = 0 : i64, scratch_operands = 1 : i64, tpu.core_type = #tpu.core_type<tc>, window_params = [{transform_indices = @transform_0, window_bounds = array<i64: 16, 128>}, {pipeline_mode = #tpu.pipeline_mode<synchronous>, transform_indices = @transform_1, window_bounds = array<i64: 128, 128>}, {pipeline_mode = #tpu.pipeline_mode<synchronous>, transform_indices = @transform_2, window_bounds = array<i64: 1, 128>}, {pipeline_mode = #tpu.pipeline_mode<synchronous>, transform_indices = @transform_3, window_bounds = array<i64: 128, 128>}, {pipeline_mode = #tpu.pipeline_mode<synchronous>, transform_indices = @transform_4, window_bounds = array<i64: 1, 128>}, {transform_indices = @transform_5, window_bounds = array<i64: 16, 128>}]} {
    %c0 = arith.constant 0 : index
    %c0_0 = arith.constant 0 : index
    %0 = vector.load %arg1[%c0, %c0_0] : memref<16x128xbf16, #tpu.memory_space<vmem>>, vector<16x128xbf16>
    %c0_1 = arith.constant 0 : index
    %c0_2 = arith.constant 0 : index
    %1 = vector.load %arg2[%c0_1, %c0_2] : memref<128x128xbf16, #tpu.memory_space<vmem>>, vector<128x128xbf16>
    %cst = arith.constant dense<0.000000e+00> : vector<16x128xf32>
    %2 = tpu.matmul %0, %1, %cst {dimension_numbers = #tpu.dot_dimension_numbers<[1], [0], [0], [1], [0, 0, 1, 1], [], []>} : vector<16x128xbf16>, vector<128x128xbf16>, vector<16x128xf32> -> vector<16x128xf32>
    %c0_3 = arith.constant 0 : index
    %c0_4 = arith.constant 0 : index
    %3 = vector.load %arg3[%c0_3, %c0_4] : memref<1x128xf32, #tpu.memory_space<vmem>>, vector<1x128xf32>
    %4 = vector.broadcast %3 : vector<1x128xf32> to vector<16x128xf32>
    %5 = arith.addf %2, %4 : vector<16x128xf32>
    %cst_5 = arith.constant 0.000000e+00 : f32
    %6 = vector.broadcast %cst_5 : f32 to vector<16x128xf32>
    %7 = arith.maximumf %5, %6 : vector<16x128xf32>
    %8 = arith.truncf %7 : vector<16x128xf32> to vector<16x128xbf16>
    %c0_6 = arith.constant 0 : index
    %c0_7 = arith.constant 0 : index
    %9 = vector.load %arg7[%c0_6, %c0_7] : memref<16x128xbf16, #tpu.memory_space<vmem>>, vector<16x128xbf16>
    tpu.vector_store %arg7[%c0_6, %c0_7], %8 {strides = array<i32>} : memref<16x128xbf16, #tpu.memory_space<vmem>>, vector<16x128xbf16>,
    %c0_8 = arith.constant 0 : index
    %c0_9 = arith.constant 0 : index
    %10 = vector.load %arg7[%c0_8, %c0_9] : memref<16x128xbf16, #tpu.memory_space<vmem>>, vector<16x128xbf16>
    %c0_10 = arith.constant 0 : index
    %c0_11 = arith.constant 0 : index
    %11 = vector.load %arg4[%c0_10, %c0_11] : memref<128x128xbf16, #tpu.memory_space<vmem>>, vector<128x128xbf16>
    %cst_12 = arith.constant dense<0.000000e+00> : vector<16x128xf32>
    %12 = tpu.matmul %10, %11, %cst_12 {dimension_numbers = #tpu.dot_dimension_numbers<[1], [0], [0], [1], [0, 0, 1, 1], [], []>} : vector<16x128xbf16>, vector<128x128xbf16>, vector<16x128xf32> -> vector<16x128xf32>
    %c0_13 = arith.constant 0 : index
    %c0_14 = arith.constant 0 : index
    %13 = vector.load %arg5[%c0_13, %c0_14] : memref<1x128xf32, #tpu.memory_space<vmem>>, vector<1x128xf32>
    %14 = vector.broadcast %13 : vector<1x128xf32> to vector<16x128xf32>
    %15 = arith.addf %12, %14 : vector<16x128xf32>
    %cst_15 = arith.constant 0.000000e+00 : f32
    %16 = vector.broadcast %cst_15 : f32 to vector<16x128xf32>
    %17 = arith.maximumf %15, %16 : vector<16x128xf32>
    %c0_16 = arith.constant 0 : index
    %c0_17 = arith.constant 0 : index
    %18 = vector.load %arg6[%c0_16, %c0_17] : memref<16x128xf32, #tpu.memory_space<vmem>>, vector<16x128xf32>
    tpu.vector_store %arg6[%c0_16, %c0_17], %17 {strides = array<i32>} : memref<16x128xf32, #tpu.memory_space<vmem>>, vector<16x128xf32>,
    return
  }
  func.func @transform_0(%arg0: i32) -> (i32, i32) {
    %c0_i32 = arith.constant 0 : i32
    %c0_i32_0 = arith.constant 0 : i32
    return %arg0, %c0_i32 : i32, i32
  }
  func.func @transform_1(%arg0: i32) -> (i32, i32) {
    %c0_i32 = arith.constant 0 : i32
    %c0_i32_0 = arith.constant 0 : i32
    %c0_i32_1 = arith.constant 0 : i32
    return %c0_i32, %c0_i32_0 : i32, i32
  }
  func.func @transform_2(%arg0: i32) -> (i32, i32) {
    %c0_i32 = arith.constant 0 : i32
    %c0_i32_0 = arith.constant 0 : i32
    %c0_i32_1 = arith.constant 0 : i32
    return %c0_i32, %c0_i32_0 : i32, i32
  }
  func.func @transform_3(%arg0: i32) -> (i32, i32) {
    %c0_i32 = arith.constant 0 : i32
    %c0_i32_0 = arith.constant 0 : i32
    %c0_i32_1 = arith.constant 0 : i32
    return %c0_i32, %c0_i32_0 : i32, i32
  }
  func.func @transform_4(%arg0: i32) -> (i32, i32) {
    %c0_i32 = arith.constant 0 : i32
    %c0_i32_0 = arith.constant 0 : i32
    %c0_i32_1 = arith.constant 0 : i32
    return %c0_i32, %c0_i32_0 : i32, i32
  }
  func.func @transform_5(%arg0: i32) -> (i32, i32) {
    %c0_i32 = arith.constant 0 : i32
    %c0_i32_0 = arith.constant 0 : i32
    return %arg0, %c0_i32 : i32, i32
  }
}

</mosaic_0001>

<bundles_post_ra>
// kernel: tpu_custom_call.1
= control target key start
LH: loop header
LB: loop body
LE: loop exit
PB: predicated region body
PF: predicated region fallthrough
CT: control target
= control target key end

     0   :  { %10 = vsyncpa [#allocation4], 0  ;;  %s630_s0 = inlined_call_operand.hbm [shape: bf16[16,128], index: 0, kind: input, shape index: {}]   ;;  %s631_s1 = inlined_call_operand.hbm [shape: bf16[128,128], index: 1, kind: input, shape index: {}]   ;;  %s632_s2 = inlined_call_operand.vmem [shape: f32[1,128], index: 2, kind: input, shape index: {}]   ;;  %s633_s3 = inlined_call_operand.hbm [shape: bf16[128,128], index: 3, kind: input, shape index: {}]   ;;  %s634_s4 = inlined_call_operand.vmem [shape: f32[1,128], index: 4, kind: input, shape index: {}]   ;;  %s635_s5 = inlined_call_operand.hbm [shape: f32[16,128], index: 5, kind: output, shape index: {}]  }
   0x1   :  { %11 = vsyncpa [#allocation7], 0 }
   0x2   :  { %12 = vsyncpa [#allocation5], 0  ;;  %s520_s18 = smov [#allocation6]   ;;  %s521_s20 = smov [#allocation3]  }
   0x3   :  { %s30_s19 = sshll.u32 %s520_s18, 4  ;;  %s18_s21 = sshll.u32 %s521_s20, 4  ;;  %s31_s19 = int_to_ptr.vmem [resolvable:$true] %s30_s19  ;;  %s560_s21 = int_to_ptr.vmem [resolvable:$true] %s18_s21 }
   0x4   :  { %s426_s24 = scalar_lea.hbm %s631_s1, 1024 }
   0x5   :  { %p427_p0 = scmp.ne.s32.totalorder %s631_s1, %s426_s24  ;;  %p430_p1 = scmp.lt.u32.totalorder %s426_s24, %s631_s1 }
   0x7   :  { %p432_p2 = pnand %p430_p1, %p427_p0 }
   0x9   :  { %435 = shalt.err (!%p432_p2)
}
   0xa   :  { %s436_s29 = scalar_lea.vmem %s31_s19, 1024  ;;  %p441_p4 = scmp.lt.s32.totalorder %s31_s19, %s31_s19 }
   0xb   :  { %p437_p3 = scmp.ne.s32.totalorder %s31_s19, %s436_s29  ;;  %p442_p5 = scmp.lt.s32.totalorder %s436_s29, %s436_s29 }
   0xd   :  { %p443_p6 = por %p442_p5, %p441_p4 }
   0xf   :  { %p444_p7 = pnand %p443_p6, %p437_p3 }
  0x11   :  { %447 = shalt.err (!%p444_p7)
}
  0x12   :  { %s522_s30 = smov 64   ;;  %s523_s6 = smov 4  }
  0x13   :  { %36 = dma.hbm_to_vmem [thread:$0]  %s631_s1, 1024, %s31_s19, [#allocation7], %s522_s30, %s522_s30, %s523_s6  }
  0x14   :  { %s448_s11 = scalar_lea.hbm %s630_s0, 128 }
  0x15   :  { %p449_p8 = scmp.ne.s32.totalorder %s630_s0, %s448_s11  ;;  %p452_p9 = scmp.lt.u32.totalorder %s448_s11, %s630_s0 }
  0x17   :  { %p454_p10 = pnand %p452_p9, %p449_p8 }
  0x19   :  { %457 = shalt.err (!%p454_p10)
}
  0x1a   :  { %s458_s16 = scalar_lea.vmem %s560_s21, 128  ;;  %p463_p12 = scmp.lt.s32.totalorder %s560_s21, %s560_s21 }
  0x1b   :  { %p459_p11 = scmp.ne.s32.totalorder %s560_s21, %s458_s16  ;;  %p464_p13 = scmp.lt.s32.totalorder %s458_s16, %s458_s16 }
  0x1d   :  { %p465_p0 = por %p464_p13, %p463_p12 }
  0x1f   :  { %p466_p1 = pnand %p465_p0, %p459_p11 }
  0x21   :  { %469 = shalt.err (!%p466_p1)
}
  0x22   :  { %24 = dma.hbm_to_vmem [thread:$0]  %s630_s0, 128, %s560_s21, [#allocation4], %s522_s30, %s522_s30, %s523_s6  }
  0x23   :  { %s524_s18 = smov [#allocation8]   ;;  %s470_s23 = scalar_lea.hbm %s633_s3, 1024 }
  0x24   :  { %s44_s19 = sshll.u32 %s524_s18, 4  ;;  %p471_p2 = scmp.ne.s32.totalorder %s633_s3, %s470_s23  ;;  %s45_s19 = int_to_ptr.vmem [resolvable:$true] %s44_s19 }
  0x25   :  { %p474_p3 = scmp.lt.u32.totalorder %s470_s23, %s633_s3 }
  0x27   :  { %p476_p4 = pnand %p474_p3, %p471_p2 }
  0x29   :  { %479 = shalt.err (!%p476_p4)
}
  0x2a   :  { %s480_s28 = scalar_lea.vmem %s45_s19, 1024  ;;  %p485_p6 = scmp.lt.s32.totalorder %s45_s19, %s45_s19 }
  0x2b   :  { %p481_p5 = scmp.ne.s32.totalorder %s45_s19, %s480_s28  ;;  %p486_p7 = scmp.lt.s32.totalorder %s480_s28, %s480_s28 }
  0x2d   :  { %p487_p8 = por %p486_p7, %p485_p6 }
  0x2f   :  { %p488_p9 = pnand %p487_p8, %p481_p5 }
  0x31   :  { %491 = shalt.err (!%p488_p9)
}
  0x32   :  { %50 = dma.hbm_to_vmem [thread:$0]  %s633_s3, 1024, %s45_s19, [#allocation7], %s522_s30, %s522_s30, %s523_s6  }
  0x33   :  { %514 = dma.done.wait [#allocation4], 128  }
  0x34   :  { %515 = vsyncadd [#allocation4], 4294967168 }
  0x35   :  { %516 = dma.done.wait [#allocation7], 2048  }
  0x36   :  { %517 = vsyncadd [#allocation7], 4294965248  ;;  %v525_v0 = vmov 0.0   ;;  %vm526_vm0 = vmmov 0   ;;  %v409_v1 = vld [vmem:[#allocation6] sm:$0xff]   ;;  %v410_v2 = vld [vmem:[#allocation6 + $0x8] sm:$0xff]  }
  0x37   :  { %359 = vmatprep.subr.bf16.mxu0 %v525_v0  ;;  %375 = vmatprep.mubr.msk.bf16.mxu0 %vm526_vm0, %v525_v0  ;;  %v411_v3 = vld [vmem:[#allocation6 + $0x10] sm:$0xff]   ;;  %v418_v4 = vld [vmem:[#allocation8] sm:$0xff]   ;;  %v412_v5 = vld [vmem:[#allocation6 + $0x18] sm:$0xff]   ;;  %s527_s7 = smov [#allocation9]  }
  0x38   :  { %379 = vmatprep.subr.bf16.mxu1 %v525_v0  ;;  %395 = vmatprep.mubr.msk.bf16.mxu1 %vm526_vm0, %v525_v0  ;;  %v419_v6 = vld [vmem:[#allocation8 + $0x8] sm:$0xff]   ;;  %v413_v7 = vld [vmem:[#allocation6 + $0x20] sm:$0xff]   ;;  %v420_v8 = vld [vmem:[#allocation8 + $0x10] sm:$0xff]   ;;  %s309_s8 = sshll.u32 %s527_s7, 4  ;;  %s310_s8 = int_to_ptr.vmem [resolvable:$true] %s309_s8 }
  0x39   :  { %360 = vmatpush3.bf16.msra.mxu0 %v409_v1  ;;  %380 = vmatpush3.bf16.msra.mxu1 %v418_v4  ;;  %v414_v9 = vld [vmem:[#allocation6 + $0x28] sm:$0xff]   ;;  %v421_v10 = vld [vmem:[#allocation8 + $0x18] sm:$0xff]   ;;  %v415_v11 = vld [vmem:[#allocation6 + $0x30] sm:$0xff]   ;;  %p497_p11 = scmp.lt.s32.totalorder %s310_s8, %s310_s8 }
  0x3a   :  { %361 = vmatprep.subr.bf16.mxu0 %v525_v0  ;;  %381 = vmatprep.subr.bf16.mxu1 %v525_v0  ;;  %v422_v12 = vld [vmem:[#allocation8 + $0x20] sm:$0xff]   ;;  %v416_v13 = vld [vmem:[#allocation6 + $0x38] sm:$0xff]   ;;  %v423_v14 = vld [vmem:[#allocation8 + $0x28] sm:$0xff]  }
  0x3b   :  { %v417_v15 = vld [vmem:[#allocation3] sm:$0xff]   ;;  %v424_v16 = vld [vmem:[#allocation8 + $0x30] sm:$0xff]  }
  0x3c   :  { %v425_v17 = vld [vmem:[#allocation8 + $0x38] sm:$0xff]  }
  0x3d   :  { %362 = vmatpush3.bf16.msra.mxu0 %v410_v2  ;;  %382 = vmatpush3.bf16.msra.mxu1 %v419_v6  ;;  %v322_v18 = vld [vmem:[%s632_s2] ss:$0 sm:$0xff]  ;;  %s492_s2 = scalar_lea.vmem %s310_s8, 256 }
  0x3e   :  { %363 = vmatprep.subr.bf16.mxu0 %v525_v0  ;;  %383 = vmatprep.subr.bf16.mxu1 %v525_v0  ;;  %v332_v28 = vld [vmem:[%s634_s4] ss:$0 sm:$0xff]  ;;  %p493_p10 = scmp.ne.s32.totalorder %s310_s8, %s492_s2  ;;  %p498_p12 = scmp.lt.s32.totalorder %s492_s2, %s492_s2 }
  0x40   :  { %p499_p13 = por %p498_p12, %p497_p11 }
  0x41   :  { %364 = vmatpush3.bf16.msra.mxu0 %v411_v3  ;;  %384 = vmatpush3.bf16.msra.mxu1 %v420_v8 }
  0x42   :  { %365 = vmatprep.subr.bf16.mxu0 %v525_v0  ;;  %385 = vmatprep.subr.bf16.mxu1 %v525_v0  ;;  %p500_p0 = pnand %p499_p13, %p493_p10 }
  0x45   :  { %366 = vmatpush3.bf16.msra.mxu0 %v412_v5  ;;  %386 = vmatpush3.bf16.msra.mxu1 %v421_v10 }
  0x46   :  { %367 = vmatprep.subr.bf16.mxu0 %v525_v0  ;;  %387 = vmatprep.subr.bf16.mxu1 %v525_v0 }
  0x49   :  { %368 = vmatpush3.bf16.msra.mxu0 %v413_v7  ;;  %388 = vmatpush3.bf16.msra.mxu1 %v422_v12 }
  0x4a   :  { %369 = vmatprep.subr.bf16.mxu0 %v525_v0  ;;  %389 = vmatprep.subr.bf16.mxu1 %v525_v0 }
  0x4d   :  { %370 = vmatpush3.bf16.msra.mxu0 %v414_v9  ;;  %390 = vmatpush3.bf16.msra.mxu1 %v423_v14 }
  0x4e   :  { %371 = vmatprep.subr.bf16.mxu0 %v525_v0  ;;  %391 = vmatprep.subr.bf16.mxu1 %v525_v0 }
  0x51   :  { %372 = vmatpush3.bf16.msra.mxu0 %v415_v11  ;;  %392 = vmatpush3.bf16.msra.mxu1 %v424_v16 }
  0x52   :  { %373 = vmatprep.subr.bf16.mxu0 %v525_v0  ;;  %393 = vmatprep.subr.bf16.mxu1 %v525_v0 }
  0x55   :  { %374 = vmatpush3.bf16.msra.mxu0 %v416_v13  ;;  %394 = vmatpush3.bf16.msra.mxu1 %v425_v17 }
  0x58   :  { %376 = vmatmul.mubr.bf16.vlgmr.msra.gmra.mrb[0].mxu0 %v417_v15 }
 0x12b   :  { %v176_v19 = vpop.f32.mrb[0].mxu0 }
 0x12c   :  { %v177_v20 = vadd.f32 %v322_v18, %v176_v19  ;;  %v377_v21 = vpop.f32.mrb[1].mxu0 }
 0x12d   :  { %v179_v22 = vpop.f32.mrb[2].mxu0 }
 0x12e   :  { %v180_v23 = vadd.f32 %v322_v18, %v179_v22  ;;  %v378_v24 = vpop.f32.mrb[3].mxu0  ;;  %v183_v25 = vmax.f32 %v177_v20, 0.0 }
 0x130   :  { %v184_v26 = vmax.f32 %v180_v23, 0.0 }
 0x132   :  { %v185_v27 = vpack.c.bf16 %v184_v26, %v183_v25 }
 0x134   :  { %396 = vmatmul.mubr.bf16.vlgmr.msra.gmra.mrb[0].mxu1 %v185_v27 }
 0x207   :  { %v293_v29 = vpop.f32.mrb[0].mxu1 }
 0x208   :  { %v294_v30 = vadd.f32 %v332_v28, %v293_v29  ;;  %v397_v31 = vpop.f32.mrb[1].mxu1 }
 0x209   :  { %v296_v32 = vpop.f32.mrb[2].mxu1 }
 0x20a   :  { %v300_v33 = vmax.f32 %v294_v30, 0.0  ;;  %v297_v34 = vadd.f32 %v332_v28, %v296_v32  ;;  %v398_v35 = vpop.f32.mrb[3].mxu1 }
 0x20c   :  { %302 = vst [vmem:[#allocation9] sm:$0xff] %v300_v33  ;;  %v301_v36 = vmax.f32 %v297_v34, 0.0 }
 0x20e   :  { %303 = vst [vmem:[#allocation9 + $0x8] sm:$0xff] %v301_v36 }
 0x20f   :  { %503 = shalt.err (!%p500_p0)
}
 0x210   :  { %s504_s10 = scalar_lea.hbm %s635_s5, 256 }
 0x211   :  { %p505_p1 = scmp.ne.s32.totalorder %s635_s5, %s504_s10  ;;  %p508_p2 = scmp.lt.u32.totalorder %s504_s10, %s635_s5 }
 0x213   :  { %p510_p3 = pnand %p508_p2, %p505_p1 }
 0x215   :  { %513 = shalt.err (!%p510_p3)
}
 0x216   :  { %s528_s15 = smov 128   ;;  %s529_s16 = smov 8  }
 0x217   :  { %315 = dma.vmem_to_hbm [thread:$0]  %s310_s8, 256, %s635_s5, [#allocation5], %s528_s15, %s528_s15, %s529_s16  }
 0x218   :  { %518 = dma.done.wait [#allocation5], 256  }
 0x219   :  { %519 = vsyncadd [#allocation5], 4294967040 }
 0x21a   :  { %319 = vsyncpa [#allocation4], 1 }
 0x21b   :  { %320 = vsyncpa [#allocation7], 1 }
 0x21c   :  { %321 = vsyncpa [#allocation5], 1 }

</bundles_post_ra>
